<compile_context>
chip_gen: v6e
topology: v6e:2x2x1
jax: 0.10.0
libtpu: 0.0.40
codegen_flags: <defaults>
</compile_context>

<pallas_src>
import functools

import jax
import jax.numpy as jnp
import numpy as np
from jax.experimental import pallas as pl
from jax.experimental.pallas import tpu as pltpu

BN_EPS = 1e-5
LANE = 128
VMEM_LIMIT = 48 * 1024 * 1024   # < v7x's 64 MiB physical VMEM


def _round_up(x, m):
    return (x + m - 1) // m * m


def conv_stats_kernel(p_ref, w_ref, stats_ref):
    """Pass 1: conv-as-matmul for one row tile -> per-tile per-channel (sum, sumsq)."""
    y = jnp.dot(p_ref[...], w_ref[...], preferred_element_type=jnp.float32)
    s = jnp.sum(y, axis=0, keepdims=True)          # (1, C)  per-channel sum
    ss = jnp.sum(y * y, axis=0, keepdims=True)     # (1, C)  per-channel sum of squares
    stats_ref[...] = jnp.concatenate([s, ss], axis=0).reshape(stats_ref.shape)


def conv_bn_relu_kernel(p_ref, w_ref, scale_ref, shift_ref, o_ref):
    """Pass 2: recompute the conv matmul, apply folded BN affine + ReLU."""
    y = jnp.dot(p_ref[...], w_ref[...], preferred_element_type=jnp.float32)
    o_ref[...] = jnp.maximum(y * scale_ref[...] + shift_ref[...], 0.0)


def _im2col(x, k, stride, pad):
    """x: (N, Cin, H, W) -> patches (N*Ho*Wo, Cin*k*k); rows ordered (n, ho, wo)."""
    N, C, H, W = x.shape
    xp = jnp.pad(x, ((0, 0), (0, 0), (pad, pad), (pad, pad)))
    Ho = (H + 2 * pad - k) // stride + 1
    Wo = (W + 2 * pad - k) // stride + 1
    taps = []
    for i in range(k):          # kh
        for j in range(k):      # kw
            taps.append(xp[:, :, i:i + stride * Ho:stride, j:j + stride * Wo:stride])
    p = jnp.stack(taps, axis=2)                    # (N, Cin, k*k, Ho, Wo)
    p = p.transpose(0, 3, 4, 1, 2)                 # (N, Ho, Wo, Cin, k*k)
    return p.reshape(N * Ho * Wo, C * k * k), Ho, Wo


@functools.partial(jax.jit, static_argnames=("k", "stride", "pad", "tile_rows"))
def conv_bn_relu(x, weight, bias, gamma, beta, *, k=3, stride=2, pad=1,
                 tile_rows=512):
    """x: (N, Cin, H, W); weight: (Cout, Cin, k, k) (PyTorch OIHW). Returns NCHW."""
    N, Cin, H, W = x.shape
    Cout = weight.shape[0]
    Kdim = Cin * k * k

    # BatchNorm's mean subtraction cancels a per-channel conv bias exactly, so it is
    # never applied: saves a (rows, Cout) VPU pass and one input DMA.
    del bias

    # bf16 before im2col: halves the XLA patch-building traffic; numerically identical
    # to casting the patches afterwards (the cast commutes with gather/pad).
    patches, Ho, Wo = _im2col(x.astype(jnp.bfloat16), k, stride, pad)
    rows = N * Ho * Wo

    # 128-aligned (lane-dense) padding for dense MXU tiles and unmasked stores.
    K_pad = _round_up(Kdim, LANE)
    C_pad = _round_up(Cout, LANE)
    T = min(tile_rows, _round_up(rows, LANE))      # row tile, multiple of 128
    rows_pad = _round_up(rows, T)
    n_tiles = rows_pad // T

    patches = jnp.pad(patches, ((0, rows_pad - rows), (0, K_pad - Kdim)))
    w_mat = jnp.pad(weight.reshape(Cout, Kdim).T.astype(jnp.bfloat16),
                    ((0, K_pad - Kdim), (0, C_pad - Cout)))

    matmul_flops = 2 * rows_pad * K_pad * C_pad

    # ---- Pass 1: per-tile partial BN statistics (no conv output written to HBM) ----
    part = pl.pallas_call(
        conv_stats_kernel,
        out_shape=jax.ShapeDtypeStruct((n_tiles, 2, C_pad), jnp.float32),
        grid=(n_tiles,),
        in_specs=[pl.BlockSpec((T, K_pad), lambda i: (i, 0)),
                  pl.BlockSpec((K_pad, C_pad), lambda i: (0, 0))],
        out_specs=pl.BlockSpec((1, 2, C_pad), lambda i: (i, 0, 0)),
        compiler_params=pltpu.CompilerParams(
            dimension_semantics=("parallel",),
            vmem_limit_bytes=VMEM_LIMIT),
        cost_estimate=pl.CostEstimate(
            flops=matmul_flops, transcendentals=0,
            bytes_accessed=(patches.size * 2 + w_mat.size * 2
                            + n_tiles * 2 * C_pad * 4)),
    )(patches, w_mat)

    # Global training-mode BN statistics. True row count in the denominators; padded
    # rows/channels contribute nothing. Biased variance (PyTorch BN forward).
    inv_n = 1.0 / rows
    mean = jnp.sum(part[:, 0, :], axis=0) * inv_n                 # (C_pad,)
    var = jnp.sum(part[:, 1, :], axis=0) * inv_n - mean * mean
    gamma_p = jnp.pad(gamma.astype(jnp.float32), (0, C_pad - Cout))
    beta_p = jnp.pad(beta.astype(jnp.float32), (0, C_pad - Cout))
    scale = gamma_p * jax.lax.rsqrt(var + BN_EPS)                 # gamma / std
    shift = beta_p - mean * scale
    scale = scale.reshape(1, C_pad)
    shift = shift.reshape(1, C_pad)

    # ---- Pass 2: recompute conv matmul, fuse folded BN affine + ReLU ----
    out_mat = pl.pallas_call(
        conv_bn_relu_kernel,
        out_shape=jax.ShapeDtypeStruct((rows_pad, C_pad), jnp.float32),
        grid=(n_tiles,),
        in_specs=[pl.BlockSpec((T, K_pad), lambda i: (i, 0)),
                  pl.BlockSpec((K_pad, C_pad), lambda i: (0, 0)),
                  pl.BlockSpec((1, C_pad), lambda i: (0, 0)),
                  pl.BlockSpec((1, C_pad), lambda i: (0, 0))],
        out_specs=pl.BlockSpec((T, C_pad), lambda i: (i, 0)),
        compiler_params=pltpu.CompilerParams(
            dimension_semantics=("parallel",),
            vmem_limit_bytes=VMEM_LIMIT),
        cost_estimate=pl.CostEstimate(
            flops=matmul_flops, transcendentals=0,
            bytes_accessed=(patches.size * 2 + w_mat.size * 2
                            + 2 * C_pad * 4 + rows_pad * C_pad * 4)),
    )(patches, w_mat, scale, shift)

    # Slice off the padding; rows ordered (n, ho, wo) -> NCHW (module's public layout).
    out_mat = out_mat[:rows, :Cout]
    return out_mat.reshape(N, Ho, Wo, Cout).transpose(0, 3, 1, 2)


def _reference(x, weight, bias, gamma, beta, *, stride=2, pad=1):
    y = jax.lax.conv_general_dilated(
        x.astype(jnp.float32), weight.astype(jnp.float32),
        window_strides=(stride, stride), padding=[(pad, pad), (pad, pad)],
        dimension_numbers=("NCHW", "OIHW", "NCHW"))
    y = y + bias.reshape(1, -1, 1, 1)
    mean = jnp.mean(y, axis=(0, 2, 3), keepdims=True)
    var = jnp.var(y, axis=(0, 2, 3), keepdims=True)     # biased, like PyTorch BN fwd
    y = (y - mean) * jax.lax.rsqrt(var + BN_EPS)
    y = y * gamma.reshape(1, -1, 1, 1) + beta.reshape(1, -1, 1, 1)
    return jnp.maximum(y, 0.0)


if __name__ == "__main__":
    key = jax.random.PRNGKey(0)
    k_x, k_w, k_b, k_g, k_be = jax.random.split(key, 5)

    # Small shapes consistent with the module: Conv(4, 8, k=3, stride=2, pad=1)
    N, Cin, H, W, Cout, K = 2, 4, 16, 16, 8, 3
    x = jax.random.normal(k_x, (N, Cin, H, W), dtype=jnp.float32)
    weight = jax.random.normal(k_w, (Cout, Cin, K, K), dtype=jnp.float32) * 0.1
    bias = jax.random.normal(k_b, (Cout,), dtype=jnp.float32) * 0.1
    gamma = 1.0 + 0.1 * jax.random.normal(k_g, (Cout,), dtype=jnp.float32)
    beta = 0.1 * jax.random.normal(k_be, (Cout,), dtype=jnp.float32)

    out = conv_bn_relu(x, weight, bias, gamma, beta, k=K, stride=2, pad=1)
    out = jax.block_until_ready(out)

    ref = _reference(x, weight, bias, gamma, beta, stride=2, pad=1)
    assert out.shape == (N, Cout, H // 2, W // 2), out.shape
    np.testing.assert_allclose(np.asarray(out), np.asarray(ref), rtol=1e-2, atol=1e-2)

    print("KERNEL_OK")
</pallas_src>

<mosaic_0001>
module attributes {stable_mosaic.version = 11 : i64} {
  func.func @conv_stats_kernel(%arg0: i32, %arg1: memref<128x128xbf16, #tpu.memory_space<vmem>>, %arg2: memref<128x128xbf16, #tpu.memory_space<vmem>>, %arg3: memref<1x2x128xf32, #tpu.memory_space<vmem>>) attributes {dimension_semantics = [#tpu.dimension_semantics<parallel>], iteration_bounds = array<i64: 1>, scalar_prefetch = 0 : i64, scratch_operands = 0 : i64, tpu.core_type = #tpu.core_type<tc>, window_params = [{transform_indices = @transform_0, window_bounds = array<i64: 128, 128>}, {pipeline_mode = #tpu.pipeline_mode<synchronous>, transform_indices = @transform_1, window_bounds = array<i64: 128, 128>}, {transform_indices = @transform_2, window_bounds = array<i64: 1, 2, 128>}]} {
    %c0 = arith.constant 0 : index
    %c0_0 = arith.constant 0 : index
    %0 = vector.load %arg1[%c0, %c0_0] : memref<128x128xbf16, #tpu.memory_space<vmem>>, vector<128x128xbf16>
    %c0_1 = arith.constant 0 : index
    %c0_2 = arith.constant 0 : index
    %1 = vector.load %arg2[%c0_1, %c0_2] : memref<128x128xbf16, #tpu.memory_space<vmem>>, vector<128x128xbf16>
    %cst = arith.constant dense<0.000000e+00> : vector<128x128xf32>
    %2 = tpu.matmul %0, %1, %cst {dimension_numbers = #tpu.dot_dimension_numbers<[1], [0], [0], [1], [0, 0, 1, 1], [], []>} : vector<128x128xbf16>, vector<128x128xbf16>, vector<128x128xf32> -> vector<128x128xf32>
    %cst_3 = arith.constant dense<0.000000e+00> : vector<128xf32>
    %3 = vector.multi_reduction <add>, %2, %cst_3 [0] : vector<128x128xf32> to vector<128xf32>
    %4 = vector.shape_cast %3 : vector<128xf32> to vector<1x128xf32>
    %5 = arith.mulf %2, %2 : vector<128x128xf32>
    %cst_4 = arith.constant dense<0.000000e+00> : vector<128xf32>
    %6 = vector.multi_reduction <add>, %5, %cst_4 [0] : vector<128x128xf32> to vector<128xf32>
    %7 = vector.shape_cast %6 : vector<128xf32> to vector<1x128xf32>
    %8 = tpu.concatenate %4, %7 in 0 : vector<1x128xf32>, vector<1x128xf32> -> vector<2x128xf32>
    %9 = vector.shape_cast %8 : vector<2x128xf32> to vector<1x2x128xf32>
    %c0_5 = arith.constant 0 : index
    %c0_6 = arith.constant 0 : index
    %c0_7 = arith.constant 0 : index
    %10 = vector.load %arg3[%c0_5, %c0_6, %c0_7] : memref<1x2x128xf32, #tpu.memory_space<vmem>>, vector<1x2x128xf32>
    tpu.vector_store %arg3[%c0_5, %c0_6, %c0_7], %9 {strides = array<i32>} : memref<1x2x128xf32, #tpu.memory_space<vmem>>, vector<1x2x128xf32>,
    return
  }
  func.func @transform_0(%arg0: i32) -> (i32, i32) {
    %c0_i32 = arith.constant 0 : i32
    %c0_i32_0 = arith.constant 0 : i32
    return %arg0, %c0_i32 : i32, i32
  }
  func.func @transform_1(%arg0: i32) -> (i32, i32) {
    %c0_i32 = arith.constant 0 : i32
    %c0_i32_0 = arith.constant 0 : i32
    %c0_i32_1 = arith.constant 0 : i32
    return %c0_i32, %c0_i32_0 : i32, i32
  }
  func.func @transform_2(%arg0: i32) -> (i32, i32, i32) {
    %c0_i32 = arith.constant 0 : i32
    %c0_i32_0 = arith.constant 0 : i32
    %c0_i32_1 = arith.constant 0 : i32
    return %arg0, %c0_i32, %c0_i32_0 : i32, i32, i32
  }
}

module attributes {stable_mosaic.version = 11 : i64} {
  func.func @conv_bn_relu_kernel(%arg0: i32, %arg1: memref<128x128xbf16, #tpu.memory_space<vmem>>, %arg2: memref<128x128xbf16, #tpu.memory_space<vmem>>, %arg3: memref<1x128xf32, #tpu.memory_space<vmem>>, %arg4: memref<1x128xf32, #tpu.memory_space<vmem>>, %arg5: memref<128x128xf32, #tpu.memory_space<vmem>>) attributes {dimension_semantics = [#tpu.dimension_semantics<parallel>], iteration_bounds = array<i64: 1>, scalar_prefetch = 0 : i64, scratch_operands = 0 : i64, tpu.core_type = #tpu.core_type<tc>, window_params = [{transform_indices = @transform_0, window_bounds = array<i64: 128, 128>}, {pipeline_mode = #tpu.pipeline_mode<synchronous>, transform_indices = @transform_1, window_bounds = array<i64: 128, 128>}, {pipeline_mode = #tpu.pipeline_mode<synchronous>, transform_indices = @transform_2, window_bounds = array<i64: 1, 128>}, {pipeline_mode = #tpu.pipeline_mode<synchronous>, transform_indices = @transform_3, window_bounds = array<i64: 1, 128>}, {transform_indices = @transform_4, window_bounds = array<i64: 128, 128>}]} {
    %c0 = arith.constant 0 : index
    %c0_0 = arith.constant 0 : index
    %0 = vector.load %arg1[%c0, %c0_0] : memref<128x128xbf16, #tpu.memory_space<vmem>>, vector<128x128xbf16>
    %c0_1 = arith.constant 0 : index
    %c0_2 = arith.constant 0 : index
    %1 = vector.load %arg2[%c0_1, %c0_2] : memref<128x128xbf16, #tpu.memory_space<vmem>>, vector<128x128xbf16>
    %cst = arith.constant dense<0.000000e+00> : vector<128x128xf32>
    %2 = tpu.matmul %0, %1, %cst {dimension_numbers = #tpu.dot_dimension_numbers<[1], [0], [0], [1], [0, 0, 1, 1], [], []>} : vector<128x128xbf16>, vector<128x128xbf16>, vector<128x128xf32> -> vector<128x128xf32>
    %c0_3 = arith.constant 0 : index
    %c0_4 = arith.constant 0 : index
    %3 = vector.load %arg3[%c0_3, %c0_4] : memref<1x128xf32, #tpu.memory_space<vmem>>, vector<1x128xf32>
    %4 = vector.broadcast %3 : vector<1x128xf32> to vector<128x128xf32>
    %5 = arith.mulf %2, %4 : vector<128x128xf32>
    %c0_5 = arith.constant 0 : index
    %c0_6 = arith.constant 0 : index
    %6 = vector.load %arg4[%c0_5, %c0_6] : memref<1x128xf32, #tpu.memory_space<vmem>>, vector<1x128xf32>
    %7 = vector.broadcast %6 : vector<1x128xf32> to vector<128x128xf32>
    %8 = arith.addf %5, %7 : vector<128x128xf32>
    %cst_7 = arith.constant 0.000000e+00 : f32
    %9 = vector.broadcast %cst_7 : f32 to vector<128x128xf32>
    %10 = arith.maximumf %8, %9 : vector<128x128xf32>
    %c0_8 = arith.constant 0 : index
    %c0_9 = arith.constant 0 : index
    %11 = vector.load %arg5[%c0_8, %c0_9] : memref<128x128xf32, #tpu.memory_space<vmem>>, vector<128x128xf32>
    tpu.vector_store %arg5[%c0_8, %c0_9], %10 {strides = array<i32>} : memref<128x128xf32, #tpu.memory_space<vmem>>, vector<128x128xf32>,
    return
  }
  func.func @transform_0(%arg0: i32) -> (i32, i32) {
    %c0_i32 = arith.constant 0 : i32
    %c0_i32_0 = arith.constant 0 : i32
    return %arg0, %c0_i32 : i32, i32
  }
  func.func @transform_1(%arg0: i32) -> (i32, i32) {
    %c0_i32 = arith.constant 0 : i32
    %c0_i32_0 = arith.constant 0 : i32
    %c0_i32_1 = arith.constant 0 : i32
    return %c0_i32, %c0_i32_0 : i32, i32
  }
  func.func @transform_2(%arg0: i32) -> (i32, i32) {
    %c0_i32 = arith.constant 0 : i32
    %c0_i32_0 = arith.constant 0 : i32
    %c0_i32_1 = arith.constant 0 : i32
    return %c0_i32, %c0_i32_0 : i32, i32
  }
  func.func @transform_3(%arg0: i32) -> (i32, i32) {
    %c0_i32 = arith.constant 0 : i32
    %c0_i32_0 = arith.constant 0 : i32
    %c0_i32_1 = arith.constant 0 : i32
    return %c0_i32, %c0_i32_0 : i32, i32
  }
  func.func @transform_4(%arg0: i32) -> (i32, i32) {
    %c0_i32 = arith.constant 0 : i32
    %c0_i32_0 = arith.constant 0 : i32
    return %arg0, %c0_i32 : i32, i32
  }
}

</mosaic_0001>

<bundles_post_ra>
// kernel: conv_bn_relu.3
= control target key start
LH: loop header
LB: loop body
LE: loop exit
PB: predicated region body
PF: predicated region fallthrough
CT: control target
= control target key end

     0   :  { %s586_s1 = inlined_call_operand.vmem [shape: bf16[128,128], index: 1, kind: input, shape index: {}]   ;;  %s587_s0 = inlined_call_operand.vmem [shape: bf16[128,128], index: 0, kind: input, shape index: {}]   ;;  %s588_s2 = inlined_call_operand.vmem [shape: f32[1,128], index: 2, kind: input, shape index: {}]   ;;  %s589_s3 = inlined_call_operand.vmem [shape: f32[1,128], index: 3, kind: input, shape index: {}]   ;;  %s590_s4 = inlined_call_operand.vmem [shape: f32[128,128], index: 4, kind: output, shape index: {}]  }
   0x1   :  { %v407_v0 = vld [vmem:[%s586_s1 + $0x38] sm:$0xff]   ;;  %v408_v1 = vld [vmem:[%s586_s1 + $0x30] sm:$0xff]   ;;  %v409_v2 = vld [vmem:[%s586_s1 + $0x28] sm:$0xff]  }
   0x2   :  { %359 = vmatprep.subr.bf16.mxu0 %v407_v0  ;;  %391 = vmatprep.subr.bf16.mxu1 %v407_v0  ;;  %v410_v3 = vld [vmem:[%s586_s1 + $0x20] sm:$0xff]   ;;  %v411_v6 = vld [vmem:[%s586_s1 + $0x18] sm:$0xff]   ;;  %v412_v7 = vld [vmem:[%s586_s1 + $0x10] sm:$0xff]  }
   0x3   :  { %360 = vmatpush3.bf16.msra.mxu0 %v407_v0  ;;  %399 = vmatpush3.bf16.msra.mxu1 %v407_v0  ;;  %v415_v4 = vld [vmem:[%s587_s0] sm:$0xff]   ;;  %v413_v8 = vld [vmem:[%s586_s1 + $0x8] sm:$0xff]   ;;  %v419_v12 = vld [vmem:[%s587_s0 + $0x10] sm:$0xff]  }
   0x4   :  { %361 = vmatprep.subr.bf16.mxu0 %v408_v1  ;;  %392 = vmatprep.subr.bf16.mxu1 %v408_v1  ;;  %v416_v5 = vld [vmem:[%s587_s0 + $0x20] sm:$0xff]   ;;  %v417_v10 = vld [vmem:[%s587_s0 + $0x8] sm:$0xff]   ;;  %v420_v13 = vld [vmem:[%s587_s0 + $0x30] sm:$0xff]  }
   0x5   :  { %375 = vmatprep.mubr.bf16.mxu0 %v415_v4  ;;  %383 = vmatprep.mubr.bf16.mxu1 %v416_v5  ;;  %v414_v9 = vld [vmem:[%s586_s1] sm:$0xff]   ;;  %v418_v11 = vld [vmem:[%s587_s0 + $0x28] sm:$0xff]   ;;  %v421_v14 = vld [vmem:[%s587_s0 + $0x18] sm:$0xff]  }
   0x6   :  { %v422_v15 = vld [vmem:[%s587_s0 + $0x38] sm:$0xff]   ;;  %v499_v16 = vld [vmem:[%s588_s2] ss:$0 sm:$0xff] }
   0x7   :  { %362 = vmatpush3.bf16.msra.mxu0 %v408_v1  ;;  %400 = vmatpush3.bf16.msra.mxu1 %v408_v1  ;;  %v504_v18 = vld [vmem:[%s589_s3] ss:$0 sm:$0xff] }
   0x8   :  { %363 = vmatprep.subr.bf16.mxu0 %v409_v2  ;;  %393 = vmatprep.subr.bf16.mxu1 %v409_v2 }
   0xb   :  { %364 = vmatpush3.bf16.msra.mxu0 %v409_v2  ;;  %401 = vmatpush3.bf16.msra.mxu1 %v409_v2 }
   0xc   :  { %365 = vmatprep.subr.bf16.mxu0 %v410_v3  ;;  %394 = vmatprep.subr.bf16.mxu1 %v410_v3 }
   0xf   :  { %366 = vmatpush3.bf16.msra.mxu0 %v410_v3  ;;  %402 = vmatpush3.bf16.msra.mxu1 %v410_v3 }
  0x10   :  { %367 = vmatprep.subr.bf16.mxu0 %v411_v6  ;;  %395 = vmatprep.subr.bf16.mxu1 %v411_v6 }
  0x13   :  { %368 = vmatpush3.bf16.msra.mxu0 %v411_v6  ;;  %403 = vmatpush3.bf16.msra.mxu1 %v411_v6 }
  0x14   :  { %369 = vmatprep.subr.bf16.mxu0 %v412_v7  ;;  %396 = vmatprep.subr.bf16.mxu1 %v412_v7 }
  0x17   :  { %370 = vmatpush3.bf16.msra.mxu0 %v412_v7  ;;  %404 = vmatpush3.bf16.msra.mxu1 %v412_v7 }
  0x18   :  { %371 = vmatprep.subr.bf16.mxu0 %v413_v8  ;;  %397 = vmatprep.subr.bf16.mxu1 %v413_v8 }
  0x1b   :  { %372 = vmatpush3.bf16.msra.mxu0 %v413_v8  ;;  %405 = vmatpush3.bf16.msra.mxu1 %v413_v8 }
  0x1c   :  { %373 = vmatprep.subr.bf16.mxu0 %v414_v9  ;;  %398 = vmatprep.subr.bf16.mxu1 %v414_v9 }
  0x1f   :  { %374 = vmatpush3.bf16.msra.mxu0 %v414_v9  ;;  %406 = vmatpush3.bf16.msra.mxu1 %v414_v9 }
  0x22   :  { %376 = vmatmul.mubr.bf16.vlgmr.msra.gmra.mxu0 %v417_v10  ;;  %384 = vmatmul.mubr.bf16.vlgmr.msra.gmra.mxu1 %v418_v11 }
  0x23   :  { %379 = vmatprep.mubr.bf16.mxu0 %v419_v12  ;;  %387 = vmatprep.mubr.bf16.mxu1 %v420_v13 }
  0x2a   :  { %380 = vmatmul.mubr.bf16.gmra.mxu0 %v421_v14  ;;  %388 = vmatmul.mubr.bf16.gmra.mxu1 %v422_v15 }
  0xe2   :  { %v377_v17 = vpop.f32.mrf.mxu0  ;;  %v385_v19 = vpop.f32.mrf.mxu1 }
  0xe3   :  { %v252_v20 = vmul.f32 %v377_v17, %v499_v16  ;;  %v260_v21 = vmul.f32 %v385_v19, %v499_v16 }
  0xe4   :  { %v180_v22 = vpop.f32.mrf.mxu0  ;;  %v212_v23 = vpop.f32.mrf.mxu1 }
  0xe5   :  { %v275_v24 = vadd.f32 %v504_v18, %v252_v20  ;;  %v283_v25 = vadd.f32 %v504_v18, %v260_v21  ;;  %v250_v26 = vmul.f32 %v499_v16, %v180_v22  ;;  %v258_v27 = vmul.f32 %v499_v16, %v212_v23 }
  0xe6   :  { %v378_v28 = vpop.f32.mrf.mxu0  ;;  %v386_v29 = vpop.f32.mrf.mxu1 }
  0xe7   :  { %v291_v30 = vmax.f32 %v275_v24, 0.0  ;;  %v299_v31 = vmax.f32 %v283_v25, 0.0  ;;  %v273_v32 = vadd.f32 %v504_v18, %v250_v26  ;;  %v281_v33 = vadd.f32 %v504_v18, %v258_v27 }
  0xe8   :  { %v253_v34 = vmul.f32 %v378_v28, %v499_v16  ;;  %v261_v35 = vmul.f32 %v386_v29, %v499_v16  ;;  %v183_v36 = vpop.f32.mrf.mxu0  ;;  %v215_v37 = vpop.f32.mrf.mxu1 }
  0xe9   :  { %307 = vst [vmem:[%s590_s4 + $0x10] sm:$0xff] %v291_v30  ;;  %315 = vst [vmem:[%s590_s4 + $0x50] sm:$0xff] %v299_v31  ;;  %v289_v38 = vmax.f32 %v273_v32, 0.0  ;;  %v297_v39 = vmax.f32 %v281_v33, 0.0  ;;  %v251_v40 = vmul.f32 %v499_v16, %v183_v36  ;;  %v259_v41 = vmul.f32 %v499_v16, %v215_v37 }
  0xea   :  { %v276_v42 = vadd.f32 %v504_v18, %v253_v34  ;;  %v284_v43 = vadd.f32 %v504_v18, %v261_v35  ;;  %v381_v44 = vpop.f32.mrf.mxu0  ;;  %v389_v45 = vpop.f32.mrf.mxu1 }
  0xeb   :  { %305 = vst [vmem:[%s590_s4] sm:$0xff] %v289_v38  ;;  %313 = vst [vmem:[%s590_s4 + $0x40] sm:$0xff] %v297_v39  ;;  %v274_v46 = vadd.f32 %v504_v18, %v251_v40  ;;  %v282_v47 = vadd.f32 %v504_v18, %v259_v41  ;;  %v256_v48 = vmul.f32 %v381_v44, %v499_v16 }
  0xec   :  { %v264_v49 = vmul.f32 %v389_v45, %v499_v16  ;;  %v292_v50 = vmax.f32 %v276_v42, 0.0  ;;  %v300_v51 = vmax.f32 %v284_v43, 0.0  ;;  %v196_v52 = vpop.f32.mrf.mxu0  ;;  %v228_v53 = vpop.f32.mrf.mxu1 }
  0xed   :  { %v290_v54 = vmax.f32 %v274_v46, 0.0  ;;  %v298_v55 = vmax.f32 %v282_v47, 0.0  ;;  %v279_v56 = vadd.f32 %v504_v18, %v256_v48  ;;  %v254_v58 = vmul.f32 %v499_v16, %v196_v52 }
  0xee   :  { %v287_v57 = vadd.f32 %v504_v18, %v264_v49  ;;  %308 = vst [vmem:[%s590_s4 + $0x18] sm:$0xff] %v292_v50  ;;  %316 = vst [vmem:[%s590_s4 + $0x58] sm:$0xff] %v300_v51  ;;  %v262_v59 = vmul.f32 %v499_v16, %v228_v53  ;;  %v382_v60 = vpop.f32.mrf.mxu0  ;;  %v390_v61 = vpop.f32.mrf.mxu1 }
  0xef   :  { %306 = vst [vmem:[%s590_s4 + $0x8] sm:$0xff] %v290_v54  ;;  %314 = vst [vmem:[%s590_s4 + $0x48] sm:$0xff] %v298_v55  ;;  %v295_v62 = vmax.f32 %v279_v56, 0.0  ;;  %v257_v0 = vmul.f32 %v382_v60, %v499_v16  ;;  %v265_v1 = vmul.f32 %v390_v61, %v499_v16  ;;  %v277_v2 = vadd.f32 %v504_v18, %v254_v58 }
  0xf0   :  { %v303_v63 = vmax.f32 %v287_v57, 0.0  ;;  %v285_v3 = vadd.f32 %v504_v18, %v262_v59  ;;  %v199_v4 = vpop.f32.mrf.mxu0  ;;  %v231_v5 = vpop.f32.mrf.mxu1 }
  0xf1   :  { %311 = vst [vmem:[%s590_s4 + $0x30] sm:$0xff] %v295_v62  ;;  %v280_v6 = vadd.f32 %v504_v18, %v257_v0  ;;  %v288_v7 = vadd.f32 %v504_v18, %v265_v1  ;;  %v255_v8 = vmul.f32 %v499_v16, %v199_v4  ;;  %v263_v9 = vmul.f32 %v499_v16, %v231_v5 }
  0xf2   :  { %319 = vst [vmem:[%s590_s4 + $0x70] sm:$0xff] %v303_v63  ;;  %v293_v10 = vmax.f32 %v277_v2, 0.0  ;;  %v301_v11 = vmax.f32 %v285_v3, 0.0 }
  0xf3   :  { %v296_v12 = vmax.f32 %v280_v6, 0.0  ;;  %v304_v13 = vmax.f32 %v288_v7, 0.0  ;;  %v278_v14 = vadd.f32 %v504_v18, %v255_v8  ;;  %v286_v15 = vadd.f32 %v504_v18, %v263_v9 }
  0xf4   :  { %309 = vst [vmem:[%s590_s4 + $0x20] sm:$0xff] %v293_v10  ;;  %317 = vst [vmem:[%s590_s4 + $0x60] sm:$0xff] %v301_v11 }
  0xf5   :  { %312 = vst [vmem:[%s590_s4 + $0x38] sm:$0xff] %v296_v12  ;;  %320 = vst [vmem:[%s590_s4 + $0x78] sm:$0xff] %v304_v13  ;;  %v294_v16 = vmax.f32 %v278_v14, 0.0  ;;  %v302_v17 = vmax.f32 %v286_v15, 0.0 }
  0xf7   :  { %310 = vst [vmem:[%s590_s4 + $0x28] sm:$0xff] %v294_v16  ;;  %318 = vst [vmem:[%s590_s4 + $0x68] sm:$0xff] %v302_v17 }

// kernel: conv_bn_relu.2
= control target key start
LH: loop header
LB: loop body
LE: loop exit
PB: predicated region body
PF: predicated region fallthrough
CT: control target
= control target key end

     0   :  { %vm295_vm0 = vcmask 1040384   ;;  %s464_s1 = inlined_call_operand.vmem [shape: bf16[128,128], index: 1, kind: input, shape index: {}]   ;;  %s465_s0 = inlined_call_operand.vmem [shape: bf16[128,128], index: 0, kind: input, shape index: {}]   ;;  %s466_s2 = inlined_call_operand.vmem [shape: f32[1,2,128], index: 2, kind: output, shape index: {}]  }
   0x1   :  { %v382_v0 = vld [vmem:[%s464_s1 + $0x38] sm:$0xff]   ;;  %v383_v1 = vld [vmem:[%s464_s1 + $0x30] sm:$0xff]   ;;  %v384_v2 = vld [vmem:[%s464_s1 + $0x28] sm:$0xff]  }
   0x2   :  { %334 = vmatprep.subr.bf16.mxu0 %v382_v0  ;;  %366 = vmatprep.subr.bf16.mxu1 %v382_v0  ;;  %v385_v3 = vld [vmem:[%s464_s1 + $0x20] sm:$0xff]   ;;  %v386_v5 = vld [vmem:[%s464_s1 + $0x18] sm:$0xff]   ;;  %v387_v7 = vld [vmem:[%s464_s1 + $0x10] sm:$0xff]  }
   0x3   :  { %335 = vmatpush3.bf16.msra.mxu0 %v382_v0  ;;  %374 = vmatpush3.bf16.msra.mxu1 %v382_v0  ;;  %v390_v4 = vld [vmem:[%s465_s0] sm:$0xff]   ;;  %v388_v8 = vld [vmem:[%s464_s1 + $0x8] sm:$0xff]   ;;  %v392_v12 = vld [vmem:[%s465_s0 + $0x10] sm:$0xff]  }
   0x4   :  { %336 = vmatprep.subr.bf16.mxu0 %v383_v1  ;;  %367 = vmatprep.subr.bf16.mxu1 %v383_v1  ;;  %v394_v6 = vld [vmem:[%s465_s0 + $0x20] sm:$0xff]   ;;  %v391_v10 = vld [vmem:[%s465_s0 + $0x8] sm:$0xff]   ;;  %v396_v13 = vld [vmem:[%s465_s0 + $0x30] sm:$0xff]  }
   0x5   :  { %350 = vmatprep.mubr.bf16.mxu0 %v390_v4  ;;  %358 = vmatprep.mubr.bf16.mxu1 %v394_v6  ;;  %v389_v9 = vld [vmem:[%s464_s1] sm:$0xff]   ;;  %v395_v11 = vld [vmem:[%s465_s0 + $0x28] sm:$0xff]   ;;  %v393_v14 = vld [vmem:[%s465_s0 + $0x18] sm:$0xff]  }
   0x6   :  { %v397_v15 = vld [vmem:[%s465_s0 + $0x38] sm:$0xff]  }
   0x7   :  { %337 = vmatpush3.bf16.msra.mxu0 %v383_v1  ;;  %375 = vmatpush3.bf16.msra.mxu1 %v383_v1 }
   0x8   :  { %338 = vmatprep.subr.bf16.mxu0 %v384_v2  ;;  %368 = vmatprep.subr.bf16.mxu1 %v384_v2 }
   0xb   :  { %339 = vmatpush3.bf16.msra.mxu0 %v384_v2  ;;  %376 = vmatpush3.bf16.msra.mxu1 %v384_v2 }
   0xc   :  { %340 = vmatprep.subr.bf16.mxu0 %v385_v3  ;;  %369 = vmatprep.subr.bf16.mxu1 %v385_v3 }
   0xf   :  { %341 = vmatpush3.bf16.msra.mxu0 %v385_v3  ;;  %377 = vmatpush3.bf16.msra.mxu1 %v385_v3 }
  0x10   :  { %342 = vmatprep.subr.bf16.mxu0 %v386_v5  ;;  %370 = vmatprep.subr.bf16.mxu1 %v386_v5 }
  0x13   :  { %343 = vmatpush3.bf16.msra.mxu0 %v386_v5  ;;  %378 = vmatpush3.bf16.msra.mxu1 %v386_v5 }
  0x14   :  { %344 = vmatprep.subr.bf16.mxu0 %v387_v7  ;;  %371 = vmatprep.subr.bf16.mxu1 %v387_v7 }
  0x17   :  { %345 = vmatpush3.bf16.msra.mxu0 %v387_v7  ;;  %379 = vmatpush3.bf16.msra.mxu1 %v387_v7 }
  0x18   :  { %346 = vmatprep.subr.bf16.mxu0 %v388_v8  ;;  %372 = vmatprep.subr.bf16.mxu1 %v388_v8 }
  0x1b   :  { %347 = vmatpush3.bf16.msra.mxu0 %v388_v8  ;;  %380 = vmatpush3.bf16.msra.mxu1 %v388_v8 }
  0x1c   :  { %348 = vmatprep.subr.bf16.mxu0 %v389_v9  ;;  %373 = vmatprep.subr.bf16.mxu1 %v389_v9 }
  0x1f   :  { %349 = vmatpush3.bf16.msra.mxu0 %v389_v9  ;;  %381 = vmatpush3.bf16.msra.mxu1 %v389_v9 }
  0x22   :  { %351 = vmatmul.mubr.bf16.vlgmr.msra.gmra.mxu0 %v391_v10  ;;  %359 = vmatmul.mubr.bf16.vlgmr.msra.gmra.mxu1 %v395_v11 }
  0x23   :  { %354 = vmatprep.mubr.bf16.mxu0 %v392_v12  ;;  %362 = vmatprep.mubr.bf16.mxu1 %v396_v13 }
  0x2a   :  { %355 = vmatmul.mubr.bf16.gmra.mxu0 %v393_v14  ;;  %363 = vmatmul.mubr.bf16.gmra.mxu1 %v397_v15 }
  0xe2   :  { %v352_v16 = vpop.f32.mrf.mxu0  ;;  %v360_v17 = vpop.f32.mrf.mxu1 }
  0xe3   :  { %v260_v27 = vmul.f32 %v352_v16, %v352_v16  ;;  %v268_v58 = vmul.f32 %v360_v17, %v360_v17 }
  0xe4   :  { %v174_v18 = vpop.f32.mrf.mxu0  ;;  %v206_v20 = vpop.f32.mrf.mxu1 }
  0xe5   :  { %v258_v22 = vmul.f32 %v174_v18, %v174_v18  ;;  %v266_v51 = vmul.f32 %v206_v20, %v206_v20 }
  0xe6   :  { %v353_v19 = vpop.f32.mrf.mxu0  ;;  %v361_v26 = vpop.f32.mrf.mxu1 }
  0xe7   :  { %v261_v31 = vmul.f32 %v353_v19, %v353_v19  ;;  %v269_v61 = vmul.f32 %v361_v26, %v361_v26 }
  0xe8   :  { %v177_v21 = vpop.f32.mrf.mxu0  ;;  %v209_v35 = vpop.f32.mrf.mxu1 }
  0xe9   :  { %v237_v23 = vadd.f32 %v177_v21, %v174_v18  ;;  %v259_v24 = vmul.f32 %v177_v21, %v177_v21  ;;  %v267_v55 = vmul.f32 %v209_v35, %v209_v35 }
  0xea   :  { %v356_v25 = vpop.f32.mrf.mxu0  ;;  %v364_v43 = vpop.f32.mrf.mxu1 }
  0xeb   :  { %v238_v28 = vadd.f32 %v352_v16, %v237_v23  ;;  %v274_v29 = vadd.f32 %v259_v24, %v258_v22  ;;  %v264_v44 = vmul.f32 %v356_v25, %v356_v25  ;;  %v272_v7 = vmul.f32 %v364_v43, %v364_v43 }
  0xec   :  { %v190_v30 = vpop.f32.mrf.mxu0  ;;  %v222_v50 = vpop.f32.mrf.mxu1 }
  0xed   :  { %v275_v32 = vadd.f32 %v274_v29, %v260_v27  ;;  %v239_v33 = vadd.f32 %v353_v19, %v238_v28  ;;  %v262_v37 = vmul.f32 %v190_v30, %v190_v30  ;;  %v270_v2 = vmul.f32 %v222_v50, %v222_v50 }
  0xee   :  { %v357_v34 = vpop.f32.mrf.mxu0  ;;  %v365_v57 = vpop.f32.mrf.mxu1 }
  0xef   :  { %v240_v36 = vadd.f32 %v239_v33, %v190_v30  ;;  %v276_v38 = vadd.f32 %v275_v32, %v261_v31  ;;  %v265_v47 = vmul.f32 %v357_v34, %v357_v34  ;;  %v273_v10 = vmul.f32 %v365_v57, %v365_v57 }
  0xf0   :  { %v193_v39 = vpop.f32.mrf.mxu0  ;;  %v225_v0 = vpop.f32.mrf.mxu1 }
  0xf1   :  { %v277_v40 = vadd.f32 %v276_v38, %v262_v37  ;;  %v241_v41 = vadd.f32 %v240_v36, %v193_v39  ;;  %v263_v42 = vmul.f32 %v193_v39, %v193_v39  ;;  %v271_v6 = vmul.f32 %v225_v0, %v225_v0 }
  0xf3   :  { %v242_v45 = vadd.f32 %v356_v25, %v241_v41  ;;  %v278_v46 = vadd.f32 %v277_v40, %v263_v42 }
  0xf5   :  { %v243_v48 = vadd.f32 %v357_v34, %v242_v45  ;;  %v279_v49 = vadd.f32 %v278_v46, %v264_v44 }
  0xf7   :  { %v280_v52 = vadd.f32 %v279_v49, %v265_v47  ;;  %v244_v53 = vadd.f32 %v243_v48, %v206_v20 }
  0xf9   :  { %v245_v54 = vadd.f32 %v244_v53, %v209_v35  ;;  %v281_v56 = vadd.f32 %v280_v52, %v266_v51 }
  0xfb   :  { %v246_v59 = vadd.f32 %v360_v17, %v245_v54  ;;  %v282_v60 = vadd.f32 %v281_v56, %v267_v55 }
  0xfd   :  { %v283_v62 = vadd.f32 %v282_v60, %v268_v58  ;;  %v247_v63 = vadd.f32 %v361_v26, %v246_v59 }
  0xff   :  { %v248_v1 = vadd.f32 %v247_v63, %v222_v50  ;;  %v284_v3 = vadd.f32 %v283_v62, %v269_v61 }
 0x101   :  { %v285_v4 = vadd.f32 %v284_v3, %v270_v2  ;;  %v249_v5 = vadd.f32 %v248_v1, %v225_v0 }
 0x103   :  { %v250_v8 = vadd.f32 %v364_v43, %v249_v5  ;;  %v286_v9 = vadd.f32 %v285_v4, %v271_v6 }
 0x105   :  { %v251_v11 = vadd.f32 %v365_v57, %v250_v8  ;;  %v287_v12 = vadd.f32 %v286_v9, %v272_v7 }
 0x107   :  { %v252_v13 = vrot.slane %v251_v11, 4  ;;  %v288_v14 = vadd.f32 %v287_v12, %v273_v10 }
 0x109   :  { %v253_v15 = vadd.f32 %v252_v13, %v251_v11  ;;  %v289_v16 = vrot.slane %v288_v14, 4 }
 0x10b   :  { %v254_v17 = vrot.slane %v253_v15, 2  ;;  %v290_v18 = vadd.f32 %v289_v16, %v288_v14 }
 0x10d   :  { %v255_v19 = vadd.f32 %v254_v17, %v253_v15  ;;  %v291_v20 = vrot.slane %v290_v18, 2 }
 0x10f   :  { %v256_v21 = vrot.slane %v255_v19, 1  ;;  %v292_v22 = vadd.f32 %v291_v20, %v290_v18 }
 0x111   :  { %v293_v23 = vrot.slane %v292_v22, 1  ;;  %v257_v24 = vadd.f32 %v256_v21, %v255_v19 }
 0x113   :  { %v294_v25 = vadd.f32 %v293_v23, %v292_v22 }
 0x115   :  { %v296_v26 = vsel %vm295_vm0, %v257_v24, %v294_v25 }
 0x116   :  { %297 = vst [vmem:[%s466_s2] sm:$0x3] %v296_v26 }

</bundles_post_ra>
